<compile_context>
chip_gen: v7x
topology: tpu7x:2x2x1
jax: 0.10.0
libtpu: 0.0.40
codegen_flags: <defaults>
</compile_context>

<pallas_src>
import functools

import jax
import jax.numpy as jnp
from jax import lax
from jax.experimental import pallas as pl
from jax.experimental.pallas import tpu as pltpu


# ----------------------------------------------------------------------------
# small helpers
# ----------------------------------------------------------------------------
def _layernorm(y, gamma, beta, eps=1e-5):
    mu = jnp.mean(y, axis=-1, keepdims=True)
    var = jnp.mean((y - mu) ** 2, axis=-1, keepdims=True)
    return (y - mu) * lax.rsqrt(var + eps) * gamma + beta


def _pick_vmem_limit():
    """Per-generation scoped-VMEM budget (bytes); None -> compiler default."""
    try:
        kind = jax.devices()[0].device_kind.lower()
    except Exception:
        return None
    if "v7" in kind:
        return 52 * 1024 * 1024        # headroom inside v7x's 64 MiB per TC
    if "v5" in kind or "v6" in kind:
        return 100 * 1024 * 1024       # v5e / v6e have 128 MiB VMEM
    return None


def _pick_batch_block(n, s, requested=None):
    """Batch elements per grid step: keep >=2 grid steps when possible
    (pipelining + v7x dual-TC sharding) while targeting ~512 rows/step."""
    if requested is not None:
        assert n % requested == 0
        return requested
    if n <= 1:
        return n
    nb = max(1, min(n // 2, max(1, 512 // max(s, 1))))
    while n % nb:
        nb -= 1
    return nb


# ----------------------------------------------------------------------------
# Kernel body: one full TransformerBlock for a tile of NB batch elements.
# ----------------------------------------------------------------------------
def _block_body(
    x_ref, bias_ref,
    wqkv_ref, bqkv_ref, wo_ref, bo_ref,
    g1_ref, be1_ref,
    w1_ref, bf1_ref, w2_ref, bf2_ref,
    g2_ref, be2_ref,
    out_ref, scores_ref, ctx_ref,         # scores_ref may be None (inner layers)
    *, heads, head_dim, embed_size, nb, seq,
):
    E = embed_size
    rows = nb * seq
    cdt = x_ref.dtype                      # compute dtype (f32 or bf16)

    x = x_ref[...]                         # (NB, S, E)
    x2 = x.reshape(rows, E)                # fold batch into sublanes
    bias = bias_ref[...]                   # (NB, 1, S) f32 additive mask bias

    # --- fused QKV: one (NB*S, E) x (E, 3E) MXU matmul, f32 accumulation -----
    qkv = jnp.dot(x2, wqkv_ref[...], preferred_element_type=jnp.float32)
    qkv = qkv + bqkv_ref[...]              # bias kept in f32

    inv_scale = 1.0 / (float(E) ** 0.5)    # matches PyTorch 1/sqrt(embed_size)
    q = (qkv[:, 0 * E:1 * E] * inv_scale).reshape(nb, seq, E)   # scale folded in
    k = qkv[:, 1 * E:2 * E].reshape(nb, seq, E)
    v = qkv[:, 2 * E:3 * E].reshape(nb, seq, E)

    # --- attention: per-head contexts written to VMEM scratch at lane offsets -
    for h in range(heads):                 # static unroll (H small here)
        sl = slice(h * head_dim, (h + 1) * head_dim)
        qh = q[:, :, sl].astype(cdt)       # (NB, S, hd)
        kh = k[:, :, sl].astype(cdt)
        vh = v[:, :, sl].astype(cdt)

        # q @ k^T, contracting last dims (no explicit transpose / relayout)
        energy = lax.dot_general(
            qh, kh, (((2,), (2,)), ((0,), (0,))),
            preferred_element_type=jnp.float32)      # (NB, S, S)
        energy = energy + bias                        # additive mask, one add

        emax = jnp.max(energy, axis=-1, keepdims=True)
        p = jnp.exp(energy - emax)                    # f32, EUP
        den = jnp.sum(p, axis=-1, keepdims=True)      # (NB, S, 1)

        if scores_ref is not None:
            # scores-returning layer: exact reciprocal, normalized probs
            att = p * (1.0 / den)
            scores_ref[:, h, :, :] = att.astype(scores_ref.dtype)
            ctx = lax.dot_general(
                att.astype(cdt), vh, (((2,), (1,)), ((0,), (0,))),
                preferred_element_type=jnp.float32)   # (NB, S, hd)
        else:
            # inner layers: defer normalization past att@v (S*hd mults, not S*S)
            ctx = lax.dot_general(
                p.astype(cdt), vh, (((2,), (1,)), ((0,), (0,))),
                preferred_element_type=jnp.float32)   # (NB, S, hd)
            ctx = ctx * pl.reciprocal(den, approx=True)

        ctx_ref[:, sl] = ctx.reshape(rows, head_dim).astype(ctx_ref.dtype)

    # --- single output projection with K = E (no per-head MXU padding) -------
    attn_out = jnp.dot(ctx_ref[...], wo_ref[...],
                       preferred_element_type=jnp.float32) + bo_ref[...]

    # --- residual + LayerNorm1 (f32 stats); dropout p=0.0 -> identity --------
    x1 = _layernorm(attn_out + x2.astype(jnp.float32), g1_ref[...], be1_ref[...])

    # --- feed-forward ---------------------------------------------------------
    h1 = jnp.dot(x1.astype(cdt), w1_ref[...], preferred_element_type=jnp.float32)
    h1 = jnp.maximum(h1 + bf1_ref[...], 0.0)
    ff = jnp.dot(h1.astype(cdt), w2_ref[...], preferred_element_type=jnp.float32)
    ff = ff + bf2_ref[...]

    # --- residual + LayerNorm2 ------------------------------------------------
    y = _layernorm(ff + x1, g2_ref[...], be2_ref[...])
    out_ref[...] = y.reshape(nb, seq, E).astype(out_ref.dtype)


# ----------------------------------------------------------------------------
# pallas_call wrapper for one TransformerBlock.
# layer weights arrive PRE-FUSED / PRE-CAST (see prepare_encoder_params).
# ----------------------------------------------------------------------------
def transformer_block_pallas(x_emb, mask_bias, layer, *, heads, embed_size,
                             collect_scores, batch_block=None):
    """x_emb: (N, S, E) in compute dtype, mask_bias: (N, 1, S) f32 ->
       (out (N,S,E) compute dtype, scores (N,H,S,S) compute dtype or None)."""
    N, S, E = x_emb.shape
    head_dim = embed_size // heads
    hidden = layer["w1"].shape[1]
    cdt = x_emb.dtype

    NB = _pick_batch_block(N, S, batch_block)
    grid = (N // NB,)

    body = functools.partial(_block_body, heads=heads, head_dim=head_dim,
                             embed_size=embed_size, nb=NB, seq=S)
    n_in = 14
    if collect_scores:
        def kernel(*refs):
            body(*refs[:n_in], refs[n_in], refs[n_in + 1], refs[n_in + 2])
    else:
        def kernel(*refs):
            body(*refs[:n_in], refs[n_in], None, refs[n_in + 1])

    def const(shape):
        # whole array, same block every grid step (weights / biases / LN params)
        # TODO(synk): pipeline_mode=pl.Buffered(1) here (or K-tiling of w1/w2)
        # at production sizes so resident weights are not double-buffered.
        return pl.BlockSpec(shape, lambda n: (0,) * len(shape))

    in_specs = [
        pl.BlockSpec((NB, S, E), lambda n: (n, 0, 0)),   # x
        pl.BlockSpec((NB, 1, S), lambda n: (n, 0, 0)),   # additive mask bias
        const((E, 3 * E)), const((1, 3 * E)),            # fused Wqkv, bqkv
        const((E, E)), const((1, E)),                    # Wo, bo
        const((1, E)), const((1, E)),                    # ln1 gamma, beta
        const((E, hidden)), const((1, hidden)),          # ff W1, b1
        const((hidden, E)), const((1, E)),               # ff W2, b2
        const((1, E)), const((1, E)),                    # ln2 gamma, beta
    ]

    out_spec_x = pl.BlockSpec((NB, S, E), lambda n: (n, 0, 0))
    out_shape_x = jax.ShapeDtypeStruct((N, S, E), cdt)   # inter-layer acts in cdt
    if collect_scores:
        out_specs = [out_spec_x,
                     pl.BlockSpec((NB, heads, S, S), lambda n: (n, 0, 0, 0))]
        out_shape = (out_shape_x,
                     jax.ShapeDtypeStruct((N, heads, S, S), cdt))
    else:
        out_specs = out_spec_x
        out_shape = out_shape_x

    result = pl.pallas_call(
        kernel,
        out_shape=out_shape,
        grid_spec=pltpu.PrefetchScalarGridSpec(
            num_scalar_prefetch=0,
            grid=grid,
            in_specs=in_specs,
            out_specs=out_specs,
            scratch_shapes=[pltpu.VMEM((NB * S, E), cdt)],   # per-head ctx slab
        ),
        compiler_params=pltpu.CompilerParams(
            dimension_semantics=("parallel",),
            vmem_limit_bytes=_pick_vmem_limit(),
        ),
    )(
        x_emb, mask_bias,
        layer["wqkv"], layer["bqkv"], layer["wo"], layer["bo"],
        layer["ln1_g"], layer["ln1_b"],
        layer["w1"], layer["b1"],
        layer["w2"], layer["b2"],
        layer["ln2_g"], layer["ln2_b"],
    )

    if collect_scores:
        out, scores = result
        return out, scores
    return result, None


# ----------------------------------------------------------------------------
# One-time parameter preparation: fuse QKV, cast MXU weights to the compute
# dtype, keep biases / LN params in f32.  Do this ONCE, not per forward.
# ----------------------------------------------------------------------------
def prepare_encoder_params(params, compute_dtype=jnp.float32):
    f32 = jnp.float32
    layers = []
    for ly in params["layers"]:
        layers.append({
            "wqkv": jnp.concatenate([ly["wq"], ly["wk"], ly["wv"]],
                                    axis=1).astype(compute_dtype),
            "bqkv": jnp.concatenate([ly["bq"], ly["bk"], ly["bv"]],
                                    axis=1).astype(f32),
            "wo": ly["wo"].astype(compute_dtype), "bo": ly["bo"].astype(f32),
            "ln1_g": ly["ln1_g"].astype(f32), "ln1_b": ly["ln1_b"].astype(f32),
            "w1": ly["w1"].astype(compute_dtype), "b1": ly["b1"].astype(f32),
            "w2": ly["w2"].astype(compute_dtype), "b2": ly["b2"].astype(f32),
            "ln2_g": ly["ln2_g"].astype(f32), "ln2_b": ly["ln2_b"].astype(f32),
        })
    return {
        "word_emb": params["word_emb"],
        "pos_emb": params["pos_emb"],
        "layers": layers,
        "compute_dtype": compute_dtype,
    }


# ----------------------------------------------------------------------------
# Full encoder forward (embedding gather + mask bias are plain-JAX glue).
# ----------------------------------------------------------------------------
def transformer_encoder_forward(tokens, mask, prepared, *, heads, embed_size):
    cdt = prepared["compute_dtype"]
    N, S = tokens.shape
    positions = jnp.arange(S, dtype=jnp.int32)
    out = prepared["word_emb"][tokens] + prepared["pos_emb"][positions][None, :, :]
    out = out.astype(cdt)                             # inter-layer acts in cdt

    # additive mask bias computed ONCE for all layers (1 = keep, 0 = masked)
    mask_bias = jnp.where(mask[:, None, :] == 0,
                          jnp.float32(-1e20), jnp.float32(0.0))

    scores = None
    n_layers = len(prepared["layers"])
    for li, layer in enumerate(prepared["layers"]):
        is_last = (li == n_layers - 1)
        out, sc = transformer_block_pallas(
            out, mask_bias, layer, heads=heads, embed_size=embed_size,
            collect_scores=is_last)                   # scores only on last layer
        if is_last:
            scores = sc
    out = out.astype(jnp.float32)
    scores = scores.astype(jnp.float32) if scores is not None else None
    return out, scores


# ----------------------------------------------------------------------------
# Deterministic parameter init (matches nn.Module shapes; synthetic weights).
# PyTorch nn.Linear stores (out,in); here weights are (in,out) so the kernel
# computes x @ W + b with identical semantics.
# ----------------------------------------------------------------------------
def init_params(key, *, vocab, embed_size, heads, num_layers, forward_expansion,
                max_length):
    def nrm(k, shape, scale):
        return (scale * jax.random.normal(k, shape)).astype(jnp.float32)

    keys = jax.random.split(key, 2 + num_layers)
    params = {
        "word_emb": nrm(keys[0], (vocab, embed_size), 0.1),
        "pos_emb": nrm(keys[1], (max_length, embed_size), 0.1),
        "layers": [],
    }
    hidden = forward_expansion * embed_size
    for li in range(num_layers):
        lk = jax.random.split(keys[2 + li], 12)
        params["layers"].append({
            "wq": nrm(lk[0], (embed_size, embed_size), 0.05),
            "bq": nrm(lk[1], (1, embed_size), 0.01),
            "wk": nrm(lk[2], (embed_size, embed_size), 0.05),
            "bk": nrm(lk[3], (1, embed_size), 0.01),
            "wv": nrm(lk[4], (embed_size, embed_size), 0.05),
            "bv": nrm(lk[5], (1, embed_size), 0.01),
            "wo": nrm(lk[6], (embed_size, embed_size), 0.05),
            "bo": nrm(lk[7], (1, embed_size), 0.01),
            "ln1_g": jnp.ones((1, embed_size), jnp.float32),
            "ln1_b": jnp.zeros((1, embed_size), jnp.float32),
            "w1": nrm(lk[8], (embed_size, hidden), 0.05),
            "b1": nrm(lk[9], (1, hidden), 0.01),
            "w2": nrm(lk[10], (hidden, embed_size), 0.05),
            "b2": nrm(lk[11], (1, embed_size), 0.01),
            "ln2_g": jnp.ones((1, embed_size), jnp.float32),
            "ln2_b": jnp.zeros((1, embed_size), jnp.float32),
        })
    return params


# ----------------------------------------------------------------------------
# Pure-JAX reference (mirrors the PyTorch forward exactly) for validation.
# ----------------------------------------------------------------------------
def reference_forward(tokens, mask, params, *, heads, embed_size):
    N, S = tokens.shape
    hd = embed_size // heads
    positions = jnp.arange(S, dtype=jnp.int32)
    out = params["word_emb"][tokens] + params["pos_emb"][positions][None, :, :]
    scores = None
    for layer in params["layers"]:
        x = out
        v = x @ layer["wv"] + layer["bv"]
        k = x @ layer["wk"] + layer["bk"]
        q = x @ layer["wq"] + layer["bq"]
        v = v.reshape(N, S, heads, hd)
        k = k.reshape(N, S, heads, hd)
        q = q.reshape(N, S, heads, hd)
        energy = jnp.einsum("nqhd,nkhd->nhqk", q, k)
        energy = jnp.where(mask[:, None, None, :] == 0, -1e20, energy)
        att = jax.nn.softmax(energy / (embed_size ** 0.5), axis=3)
        a = jnp.einsum("nhql,nlhd->nqhd", att, v).reshape(N, S, embed_size)
        a = a @ layer["wo"] + layer["bo"]

        def ln(y, g, b, eps=1e-5):
            mu = jnp.mean(y, axis=-1, keepdims=True)
            var = jnp.mean((y - mu) ** 2, axis=-1, keepdims=True)
            return (y - mu) / jnp.sqrt(var + eps) * g + b

        x1 = ln(a + x, layer["ln1_g"], layer["ln1_b"])
        ff = jnp.maximum(x1 @ layer["w1"] + layer["b1"], 0.0) @ layer["w2"] + layer["b2"]
        out = ln(ff + x1, layer["ln2_g"], layer["ln2_b"])
        scores = att
    return out, scores


if __name__ == "__main__":
    # Small shapes consistent with the module (2 layers / 2 heads exercise the
    # head loop, lane-offset scratch writes and scores-only-on-last-layer path).
    N, S = 2, 8
    VOCAB, EMBED, HEADS, LAYERS, EXPANSION, MAXLEN = 50, 32, 2, 2, 4, 350

    key = jax.random.PRNGKey(0)
    kp, kt = jax.random.split(key)
    params = init_params(kp, vocab=VOCAB, embed_size=EMBED, heads=HEADS,
                         num_layers=LAYERS, forward_expansion=EXPANSION,
                         max_length=MAXLEN)

    tokens = jax.random.randint(kt, (N, S), 0, VOCAB, dtype=jnp.int32)
    mask = jnp.ones((N, S), jnp.int32).at[1, -2:].set(0)  # pad last 2 of batch 1

    ref_out, ref_scores = reference_forward(
        tokens, mask, params, heads=HEADS, embed_size=EMBED)

    # ---- f32 compute path: tight check against the reference ---------------
    prep32 = prepare_encoder_params(params, compute_dtype=jnp.float32)
    out32, sc32 = transformer_encoder_forward(
        tokens, mask, prep32, heads=HEADS, embed_size=EMBED)
    out32 = jax.block_until_ready(out32)
    sc32 = jax.block_until_ready(sc32)
    assert out32.shape == (N, S, EMBED) and sc32.shape == (N, HEADS, S, S)
    assert jnp.allclose(out32, ref_out, atol=2e-3, rtol=2e-3)
    assert jnp.allclose(sc32, ref_scores, atol=2e-3, rtol=2e-3)

    # ---- bf16 compute path (MXU-rate dtype, f32 accumulation): looser check -
    prep16 = prepare_encoder_params(params, compute_dtype=jnp.bfloat16)
    out16, sc16 = transformer_encoder_forward(
        tokens, mask, prep16, heads=HEADS, embed_size=EMBED)
    out16 = jax.block_until_ready(out16)
    sc16 = jax.block_until_ready(sc16)
    assert out16.shape == (N, S, EMBED) and sc16.shape == (N, HEADS, S, S)
    assert jnp.allclose(out16, ref_out, atol=6e-2, rtol=6e-2)
    assert jnp.allclose(sc16, ref_scores, atol=3e-2, rtol=3e-2)

    print("KERNEL_OK")
</pallas_src>

<mosaic_0001>
module attributes {stable_mosaic.version = 11 : i64} {
  func.func @kernel(%arg0: i32, %arg1: memref<1x8x32xf32, #tpu.memory_space<vmem>>, %arg2: memref<1x1x8xf32, #tpu.memory_space<vmem>>, %arg3: memref<32x96xf32, #tpu.memory_space<vmem>>, %arg4: memref<1x96xf32, #tpu.memory_space<vmem>>, %arg5: memref<32x32xf32, #tpu.memory_space<vmem>>, %arg6: memref<1x32xf32, #tpu.memory_space<vmem>>, %arg7: memref<1x32xf32, #tpu.memory_space<vmem>>, %arg8: memref<1x32xf32, #tpu.memory_space<vmem>>, %arg9: memref<32x128xf32, #tpu.memory_space<vmem>>, %arg10: memref<1x128xf32, #tpu.memory_space<vmem>>, %arg11: memref<128x32xf32, #tpu.memory_space<vmem>>, %arg12: memref<1x32xf32, #tpu.memory_space<vmem>>, %arg13: memref<1x32xf32, #tpu.memory_space<vmem>>, %arg14: memref<1x32xf32, #tpu.memory_space<vmem>>, %arg15: memref<1x8x32xf32, #tpu.memory_space<vmem>>, %arg16: memref<8x32xf32, #tpu.memory_space<vmem>>) attributes {dimension_semantics = [#tpu.dimension_semantics<parallel>], iteration_bounds = array<i64: 2>, scalar_prefetch = 0 : i64, scratch_operands = 1 : i64, tpu.core_type = #tpu.core_type<tc>, window_params = [{transform_indices = @transform_0, window_bounds = array<i64: 1, 8, 32>}, {transform_indices = @transform_1, window_bounds = array<i64: 1, 1, 8>}, {pipeline_mode = #tpu.pipeline_mode<synchronous>, transform_indices = @transform_2, window_bounds = array<i64: 32, 96>}, {pipeline_mode = #tpu.pipeline_mode<synchronous>, transform_indices = @transform_3, window_bounds = array<i64: 1, 96>}, {pipeline_mode = #tpu.pipeline_mode<synchronous>, transform_indices = @transform_4, window_bounds = array<i64: 32, 32>}, {pipeline_mode = #tpu.pipeline_mode<synchronous>, transform_indices = @transform_5, window_bounds = array<i64: 1, 32>}, {pipeline_mode = #tpu.pipeline_mode<synchronous>, transform_indices = @transform_6, window_bounds = array<i64: 1, 32>}, {pipeline_mode = #tpu.pipeline_mode<synchronous>, transform_indices = @transform_7, window_bounds = array<i64: 1, 32>}, {pipeline_mode = #tpu.pipeline_mode<synchronous>, transform_indices = @transform_8, window_bounds = array<i64: 32, 128>}, {pipeline_mode = #tpu.pipeline_mode<synchronous>, transform_indices = @transform_9, window_bounds = array<i64: 1, 128>}, {pipeline_mode = #tpu.pipeline_mode<synchronous>, transform_indices = @transform_10, window_bounds = array<i64: 128, 32>}, {pipeline_mode = #tpu.pipeline_mode<synchronous>, transform_indices = @transform_11, window_bounds = array<i64: 1, 32>}, {pipeline_mode = #tpu.pipeline_mode<synchronous>, transform_indices = @transform_12, window_bounds = array<i64: 1, 32>}, {pipeline_mode = #tpu.pipeline_mode<synchronous>, transform_indices = @transform_13, window_bounds = array<i64: 1, 32>}, {transform_indices = @transform_14, window_bounds = array<i64: 1, 8, 32>}]} {
    %c0 = arith.constant 0 : index
    %c0_0 = arith.constant 0 : index
    %c0_1 = arith.constant 0 : index
    %0 = vector.load %arg1[%c0, %c0_0, %c0_1] : memref<1x8x32xf32, #tpu.memory_space<vmem>>, vector<1x8x32xf32>
    %1 = vector.shape_cast %0 : vector<1x8x32xf32> to vector<8x32xf32>
    %c0_2 = arith.constant 0 : index
    %c0_3 = arith.constant 0 : index
    %c0_4 = arith.constant 0 : index
    %2 = vector.load %arg2[%c0_2, %c0_3, %c0_4] : memref<1x1x8xf32, #tpu.memory_space<vmem>>, vector<1x1x8xf32>
    %c0_5 = arith.constant 0 : index
    %c0_6 = arith.constant 0 : index
    %3 = vector.load %arg3[%c0_5, %c0_6] : memref<32x96xf32, #tpu.memory_space<vmem>>, vector<32x96xf32>
    %cst = arith.constant dense<0.000000e+00> : vector<8x96xf32>
    %4 = tpu.matmul %1, %3, %cst {dimension_numbers = #tpu.dot_dimension_numbers<[1], [0], [0], [1], [0, 0, 1, 1], [], []>} : vector<8x32xf32>, vector<32x96xf32>, vector<8x96xf32> -> vector<8x96xf32>
    %c0_7 = arith.constant 0 : index
    %c0_8 = arith.constant 0 : index
    %5 = vector.load %arg4[%c0_7, %c0_8] : memref<1x96xf32, #tpu.memory_space<vmem>>, vector<1x96xf32>
    %6 = vector.broadcast %5 : vector<1x96xf32> to vector<8x96xf32>
    %7 = arith.addf %4, %6 : vector<8x96xf32>
    %8 = vector.extract_strided_slice %7 {offsets = [0, 0], sizes = [8, 32], strides = [1, 1]} : vector<8x96xf32> to vector<8x32xf32>
    %cst_9 = arith.constant 0.176776692 : f32
    %9 = vector.broadcast %cst_9 : f32 to vector<8x32xf32>
    %10 = arith.mulf %8, %9 : vector<8x32xf32>
    %11 = vector.shape_cast %10 : vector<8x32xf32> to vector<1x8x32xf32>
    %12 = vector.extract_strided_slice %7 {offsets = [0, 32], sizes = [8, 32], strides = [1, 1]} : vector<8x96xf32> to vector<8x32xf32>
    %13 = vector.shape_cast %12 : vector<8x32xf32> to vector<1x8x32xf32>
    %14 = vector.extract_strided_slice %7 {offsets = [0, 64], sizes = [8, 32], strides = [1, 1]} : vector<8x96xf32> to vector<8x32xf32>
    %15 = vector.shape_cast %14 : vector<8x32xf32> to vector<1x8x32xf32>
    %16 = vector.extract_strided_slice %11 {offsets = [0, 0, 0], sizes = [1, 8, 16], strides = [1, 1, 1]} : vector<1x8x32xf32> to vector<1x8x16xf32>
    %17 = vector.extract_strided_slice %13 {offsets = [0, 0, 0], sizes = [1, 8, 16], strides = [1, 1, 1]} : vector<1x8x32xf32> to vector<1x8x16xf32>
    %18 = vector.extract_strided_slice %15 {offsets = [0, 0, 0], sizes = [1, 8, 16], strides = [1, 1, 1]} : vector<1x8x32xf32> to vector<1x8x16xf32>
    %cst_10 = arith.constant dense<0.000000e+00> : vector<1x8x8xf32>
    %19 = tpu.matmul %16, %17, %cst_10 {dimension_numbers = #tpu.dot_dimension_numbers<[2], [2], [1], [1], [0, 0, 0, 1, 1, 1], [0], [0]>} : vector<1x8x16xf32>, vector<1x8x16xf32>, vector<1x8x8xf32> -> vector<1x8x8xf32>
    %20 = vector.broadcast %2 : vector<1x1x8xf32> to vector<1x8x8xf32>
    %21 = arith.addf %19, %20 : vector<1x8x8xf32>
    %cst_11 = arith.constant dense<0xFF800000> : vector<1x8xf32>
    %22 = vector.multi_reduction <maximumf>, %21, %cst_11 [2] : vector<1x8x8xf32> to vector<1x8xf32>
    %23 = vector.shape_cast %22 : vector<1x8xf32> to vector<1x8x1xf32>
    %24 = vector.broadcast %23 : vector<1x8x1xf32> to vector<1x8x8xf32>
    %25 = arith.subf %21, %24 : vector<1x8x8xf32>
    %26 = math.exp %25 : vector<1x8x8xf32>
    %cst_12 = arith.constant dense<0.000000e+00> : vector<1x8xf32>
    %27 = vector.multi_reduction <add>, %26, %cst_12 [2] : vector<1x8x8xf32> to vector<1x8xf32>
    %28 = vector.shape_cast %27 : vector<1x8xf32> to vector<1x8x1xf32>
    %cst_13 = arith.constant dense<0.000000e+00> : vector<1x8x16xf32>
    %29 = tpu.matmul %26, %18, %cst_13 {dimension_numbers = #tpu.dot_dimension_numbers<[2], [1], [1], [2], [0, 0, 0, 1, 1, 2], [0], [0]>} : vector<1x8x8xf32>, vector<1x8x16xf32>, vector<1x8x16xf32> -> vector<1x8x16xf32>
    %30 = tpu.reciprocal %28 {approx = true} : vector<1x8x1xf32> -> vector<1x8x1xf32>
    %31 = vector.broadcast %30 : vector<1x8x1xf32> to vector<1x8x16xf32>
    %32 = arith.mulf %29, %31 : vector<1x8x16xf32>
    %33 = vector.shape_cast %32 : vector<1x8x16xf32> to vector<8x16xf32>
    %c0_14 = arith.constant 0 : index
    %c0_15 = arith.constant 0 : index
    %34 = vector.load %arg16[%c0_14, %c0_15] : memref<8x32xf32, #tpu.memory_space<vmem>>, vector<8x16xf32>
    tpu.vector_store %arg16[%c0_14, %c0_15], %33 {strides = array<i32>} : memref<8x32xf32, #tpu.memory_space<vmem>>, vector<8x16xf32>,
    %35 = vector.extract_strided_slice %11 {offsets = [0, 0, 16], sizes = [1, 8, 16], strides = [1, 1, 1]} : vector<1x8x32xf32> to vector<1x8x16xf32>
    %36 = vector.extract_strided_slice %13 {offsets = [0, 0, 16], sizes = [1, 8, 16], strides = [1, 1, 1]} : vector<1x8x32xf32> to vector<1x8x16xf32>
    %37 = vector.extract_strided_slice %15 {offsets = [0, 0, 16], sizes = [1, 8, 16], strides = [1, 1, 1]} : vector<1x8x32xf32> to vector<1x8x16xf32>
    %cst_16 = arith.constant dense<0.000000e+00> : vector<1x8x8xf32>
    %38 = tpu.matmul %35, %36, %cst_16 {dimension_numbers = #tpu.dot_dimension_numbers<[2], [2], [1], [1], [0, 0, 0, 1, 1, 1], [0], [0]>} : vector<1x8x16xf32>, vector<1x8x16xf32>, vector<1x8x8xf32> -> vector<1x8x8xf32>
    %39 = vector.broadcast %2 : vector<1x1x8xf32> to vector<1x8x8xf32>
    %40 = arith.addf %38, %39 : vector<1x8x8xf32>
    %cst_17 = arith.constant dense<0xFF800000> : vector<1x8xf32>
    %41 = vector.multi_reduction <maximumf>, %40, %cst_17 [2] : vector<1x8x8xf32> to vector<1x8xf32>
    %42 = vector.shape_cast %41 : vector<1x8xf32> to vector<1x8x1xf32>
    %43 = vector.broadcast %42 : vector<1x8x1xf32> to vector<1x8x8xf32>
    %44 = arith.subf %40, %43 : vector<1x8x8xf32>
    %45 = math.exp %44 : vector<1x8x8xf32>
    %cst_18 = arith.constant dense<0.000000e+00> : vector<1x8xf32>
    %46 = vector.multi_reduction <add>, %45, %cst_18 [2] : vector<1x8x8xf32> to vector<1x8xf32>
    %47 = vector.shape_cast %46 : vector<1x8xf32> to vector<1x8x1xf32>
    %cst_19 = arith.constant dense<0.000000e+00> : vector<1x8x16xf32>
    %48 = tpu.matmul %45, %37, %cst_19 {dimension_numbers = #tpu.dot_dimension_numbers<[2], [1], [1], [2], [0, 0, 0, 1, 1, 2], [0], [0]>} : vector<1x8x8xf32>, vector<1x8x16xf32>, vector<1x8x16xf32> -> vector<1x8x16xf32>
    %49 = tpu.reciprocal %47 {approx = true} : vector<1x8x1xf32> -> vector<1x8x1xf32>
    %50 = vector.broadcast %49 : vector<1x8x1xf32> to vector<1x8x16xf32>
    %51 = arith.mulf %48, %50 : vector<1x8x16xf32>
    %52 = vector.shape_cast %51 : vector<1x8x16xf32> to vector<8x16xf32>
    %c0_20 = arith.constant 0 : index
    %c16 = arith.constant 16 : index
    %53 = vector.load %arg16[%c0_20, %c16] : memref<8x32xf32, #tpu.memory_space<vmem>>, vector<8x16xf32>
    tpu.vector_store %arg16[%c0_20, %c16], %52 {strides = array<i32>} : memref<8x32xf32, #tpu.memory_space<vmem>>, vector<8x16xf32>,
    %c0_21 = arith.constant 0 : index
    %c0_22 = arith.constant 0 : index
    %54 = vector.load %arg16[%c0_21, %c0_22] : memref<8x32xf32, #tpu.memory_space<vmem>>, vector<8x32xf32>
    %c0_23 = arith.constant 0 : index
    %c0_24 = arith.constant 0 : index
    %55 = vector.load %arg5[%c0_23, %c0_24] : memref<32x32xf32, #tpu.memory_space<vmem>>, vector<32x32xf32>
    %cst_25 = arith.constant dense<0.000000e+00> : vector<8x32xf32>
    %56 = tpu.matmul %54, %55, %cst_25 {dimension_numbers = #tpu.dot_dimension_numbers<[1], [0], [0], [1], [0, 0, 1, 1], [], []>} : vector<8x32xf32>, vector<32x32xf32>, vector<8x32xf32> -> vector<8x32xf32>
    %c0_26 = arith.constant 0 : index
    %c0_27 = arith.constant 0 : index
    %57 = vector.load %arg6[%c0_26, %c0_27] : memref<1x32xf32, #tpu.memory_space<vmem>>, vector<1x32xf32>
    %58 = vector.broadcast %57 : vector<1x32xf32> to vector<8x32xf32>
    %59 = arith.addf %56, %58 : vector<8x32xf32>
    %60 = arith.addf %59, %1 : vector<8x32xf32>
    %c0_28 = arith.constant 0 : index
    %c0_29 = arith.constant 0 : index
    %61 = vector.load %arg7[%c0_28, %c0_29] : memref<1x32xf32, #tpu.memory_space<vmem>>, vector<1x32xf32>
    %c0_30 = arith.constant 0 : index
    %c0_31 = arith.constant 0 : index
    %62 = vector.load %arg8[%c0_30, %c0_31] : memref<1x32xf32, #tpu.memory_space<vmem>>, vector<1x32xf32>
    %cst_32 = arith.constant dense<0.000000e+00> : vector<8xf32>
    %63 = vector.multi_reduction <add>, %60, %cst_32 [1] : vector<8x32xf32> to vector<8xf32>
    %64 = vector.shape_cast %63 : vector<8xf32> to vector<8x1xf32>
    %cst_33 = arith.constant 3.200000e+01 : f32
    %65 = vector.broadcast %cst_33 : f32 to vector<8x1xf32>
    %66 = arith.divf %64, %65 : vector<8x1xf32>
    %67 = vector.broadcast %66 : vector<8x1xf32> to vector<8x32xf32>
    %68 = arith.subf %60, %67 : vector<8x32xf32>
    %69 = arith.mulf %68, %68 : vector<8x32xf32>
    %cst_34 = arith.constant dense<0.000000e+00> : vector<8xf32>
    %70 = vector.multi_reduction <add>, %69, %cst_34 [1] : vector<8x32xf32> to vector<8xf32>
    %71 = vector.shape_cast %70 : vector<8xf32> to vector<8x1xf32>
    %cst_35 = arith.constant 3.200000e+01 : f32
    %72 = vector.broadcast %cst_35 : f32 to vector<8x1xf32>
    %73 = arith.divf %71, %72 : vector<8x1xf32>
    %74 = vector.broadcast %66 : vector<8x1xf32> to vector<8x32xf32>
    %75 = arith.subf %60, %74 : vector<8x32xf32>
    %cst_36 = arith.constant 9.99999974E-6 : f32
    %76 = vector.broadcast %cst_36 : f32 to vector<8x1xf32>
    %77 = arith.addf %73, %76 : vector<8x1xf32>
    %78 = math.rsqrt %77 : vector<8x1xf32>
    %79 = vector.broadcast %78 : vector<8x1xf32> to vector<8x32xf32>
    %80 = arith.mulf %75, %79 : vector<8x32xf32>
    %81 = vector.broadcast %61 : vector<1x32xf32> to vector<8x32xf32>
    %82 = arith.mulf %80, %81 : vector<8x32xf32>
    %83 = vector.broadcast %62 : vector<1x32xf32> to vector<8x32xf32>
    %84 = arith.addf %82, %83 : vector<8x32xf32>
    %c0_37 = arith.constant 0 : index
    %c0_38 = arith.constant 0 : index
    %85 = vector.load %arg9[%c0_37, %c0_38] : memref<32x128xf32, #tpu.memory_space<vmem>>, vector<32x128xf32>
    %cst_39 = arith.constant dense<0.000000e+00> : vector<8x128xf32>
    %86 = tpu.matmul %84, %85, %cst_39 {dimension_numbers = #tpu.dot_dimension_numbers<[1], [0], [0], [1], [0, 0, 1, 1], [], []>} : vector<8x32xf32>, vector<32x128xf32>, vector<8x128xf32> -> vector<8x128xf32>
    %c0_40 = arith.constant 0 : index
    %c0_41 = arith.constant 0 : index
    %87 = vector.load %arg10[%c0_40, %c0_41] : memref<1x128xf32, #tpu.memory_space<vmem>>, vector<1x128xf32>
    %88 = vector.broadcast %87 : vector<1x128xf32> to vector<8x128xf32>
    %89 = arith.addf %86, %88 : vector<8x128xf32>
    %cst_42 = arith.constant 0.000000e+00 : f32
    %90 = vector.broadcast %cst_42 : f32 to vector<8x128xf32>
    %91 = arith.maximumf %89, %90 : vector<8x128xf32>
    %c0_43 = arith.constant 0 : index
    %c0_44 = arith.constant 0 : index
    %92 = vector.load %arg11[%c0_43, %c0_44] : memref<128x32xf32, #tpu.memory_space<vmem>>, vector<128x32xf32>
    %cst_45 = arith.constant dense<0.000000e+00> : vector<8x32xf32>
    %93 = tpu.matmul %91, %92, %cst_45 {dimension_numbers = #tpu.dot_dimension_numbers<[1], [0], [0], [1], [0, 0, 1, 1], [], []>} : vector<8x128xf32>, vector<128x32xf32>, vector<8x32xf32> -> vector<8x32xf32>
    %c0_46 = arith.constant 0 : index
    %c0_47 = arith.constant 0 : index
    %94 = vector.load %arg12[%c0_46, %c0_47] : memref<1x32xf32, #tpu.memory_space<vmem>>, vector<1x32xf32>
    %95 = vector.broadcast %94 : vector<1x32xf32> to vector<8x32xf32>
    %96 = arith.addf %93, %95 : vector<8x32xf32>
    %97 = arith.addf %96, %84 : vector<8x32xf32>
    %c0_48 = arith.constant 0 : index
    %c0_49 = arith.constant 0 : index
    %98 = vector.load %arg13[%c0_48, %c0_49] : memref<1x32xf32, #tpu.memory_space<vmem>>, vector<1x32xf32>
    %c0_50 = arith.constant 0 : index
    %c0_51 = arith.constant 0 : index
    %99 = vector.load %arg14[%c0_50, %c0_51] : memref<1x32xf32, #tpu.memory_space<vmem>>, vector<1x32xf32>
    %cst_52 = arith.constant dense<0.000000e+00> : vector<8xf32>
    %100 = vector.multi_reduction <add>, %97, %cst_52 [1] : vector<8x32xf32> to vector<8xf32>
    %101 = vector.shape_cast %100 : vector<8xf32> to vector<8x1xf32>
    %cst_53 = arith.constant 3.200000e+01 : f32
    %102 = vector.broadcast %cst_53 : f32 to vector<8x1xf32>
    %103 = arith.divf %101, %102 : vector<8x1xf32>
    %104 = vector.broadcast %103 : vector<8x1xf32> to vector<8x32xf32>
    %105 = arith.subf %97, %104 : vector<8x32xf32>
    %106 = arith.mulf %105, %105 : vector<8x32xf32>
    %cst_54 = arith.constant dense<0.000000e+00> : vector<8xf32>
    %107 = vector.multi_reduction <add>, %106, %cst_54 [1] : vector<8x32xf32> to vector<8xf32>
    %108 = vector.shape_cast %107 : vector<8xf32> to vector<8x1xf32>
    %cst_55 = arith.constant 3.200000e+01 : f32
    %109 = vector.broadcast %cst_55 : f32 to vector<8x1xf32>
    %110 = arith.divf %108, %109 : vector<8x1xf32>
    %111 = vector.broadcast %103 : vector<8x1xf32> to vector<8x32xf32>
    %112 = arith.subf %97, %111 : vector<8x32xf32>
    %cst_56 = arith.constant 9.99999974E-6 : f32
    %113 = vector.broadcast %cst_56 : f32 to vector<8x1xf32>
    %114 = arith.addf %110, %113 : vector<8x1xf32>
    %115 = math.rsqrt %114 : vector<8x1xf32>
    %116 = vector.broadcast %115 : vector<8x1xf32> to vector<8x32xf32>
    %117 = arith.mulf %112, %116 : vector<8x32xf32>
    %118 = vector.broadcast %98 : vector<1x32xf32> to vector<8x32xf32>
    %119 = arith.mulf %117, %118 : vector<8x32xf32>
    %120 = vector.broadcast %99 : vector<1x32xf32> to vector<8x32xf32>
    %121 = arith.addf %119, %120 : vector<8x32xf32>
    %122 = vector.shape_cast %121 : vector<8x32xf32> to vector<1x8x32xf32>
    %c0_57 = arith.constant 0 : index
    %c0_58 = arith.constant 0 : index
    %c0_59 = arith.constant 0 : index
    %123 = vector.load %arg15[%c0_57, %c0_58, %c0_59] : memref<1x8x32xf32, #tpu.memory_space<vmem>>, vector<1x8x32xf32>
    tpu.vector_store %arg15[%c0_57, %c0_58, %c0_59], %122 {strides = array<i32>} : memref<1x8x32xf32, #tpu.memory_space<vmem>>, vector<1x8x32xf32>,
    return
  }
  func.func @transform_0(%arg0: i32) -> (i32, i32, i32) {
    %c0_i32 = arith.constant 0 : i32
    %c0_i32_0 = arith.constant 0 : i32
    %c0_i32_1 = arith.constant 0 : i32
    return %arg0, %c0_i32, %c0_i32_0 : i32, i32, i32
  }
  func.func @transform_1(%arg0: i32) -> (i32, i32, i32) {
    %c0_i32 = arith.constant 0 : i32
    %c0_i32_0 = arith.constant 0 : i32
    %c0_i32_1 = arith.constant 0 : i32
    return %arg0, %c0_i32, %c0_i32_0 : i32, i32, i32
  }
  func.func @transform_2(%arg0: i32) -> (i32, i32) {
    %c0_i32 = arith.constant 0 : i32
    %c0_i32_0 = arith.constant 0 : i32
    %c0_i32_1 = arith.constant 0 : i32
    return %c0_i32, %c0_i32_0 : i32, i32
  }
  func.func @transform_3(%arg0: i32) -> (i32, i32) {
    %c0_i32 = arith.constant 0 : i32
    %c0_i32_0 = arith.constant 0 : i32
    %c0_i32_1 = arith.constant 0 : i32
    return %c0_i32, %c0_i32_0 : i32, i32
  }
  func.func @transform_4(%arg0: i32) -> (i32, i32) {
    %c0_i32 = arith.constant 0 : i32
    %c0_i32_0 = arith.constant 0 : i32
    %c0_i32_1 = arith.constant 0 : i32
    return %c0_i32, %c0_i32_0 : i32, i32
  }
  func.func @transform_5(%arg0: i32) -> (i32, i32) {
    %c0_i32 = arith.constant 0 : i32
    %c0_i32_0 = arith.constant 0 : i32
    %c0_i32_1 = arith.constant 0 : i32
    return %c0_i32, %c0_i32_0 : i32, i32
  }
  func.func @transform_6(%arg0: i32) -> (i32, i32) {
    %c0_i32 = arith.constant 0 : i32
    %c0_i32_0 = arith.constant 0 : i32
    %c0_i32_1 = arith.constant 0 : i32
    return %c0_i32, %c0_i32_0 : i32, i32
  }
  func.func @transform_7(%arg0: i32) -> (i32, i32) {
    %c0_i32 = arith.constant 0 : i32
    %c0_i32_0 = arith.constant 0 : i32
    %c0_i32_1 = arith.constant 0 : i32
    return %c0_i32, %c0_i32_0 : i32, i32
  }
  func.func @transform_8(%arg0: i32) -> (i32, i32) {
    %c0_i32 = arith.constant 0 : i32
    %c0_i32_0 = arith.constant 0 : i32
    %c0_i32_1 = arith.constant 0 : i32
    return %c0_i32, %c0_i32_0 : i32, i32
  }
  func.func @transform_9(%arg0: i32) -> (i32, i32) {
    %c0_i32 = arith.constant 0 : i32
    %c0_i32_0 = arith.constant 0 : i32
    %c0_i32_1 = arith.constant 0 : i32
    return %c0_i32, %c0_i32_0 : i32, i32
  }
  func.func @transform_10(%arg0: i32) -> (i32, i32) {
    %c0_i32 = arith.constant 0 : i32
    %c0_i32_0 = arith.constant 0 : i32
    %c0_i32_1 = arith.constant 0 : i32
    return %c0_i32, %c0_i32_0 : i32, i32
  }
  func.func @transform_11(%arg0: i32) -> (i32, i32) {
    %c0_i32 = arith.constant 0 : i32
    %c0_i32_0 = arith.constant 0 : i32
    %c0_i32_1 = arith.constant 0 : i32
    return %c0_i32, %c0_i32_0 : i32, i32
  }
  func.func @transform_12(%arg0: i32) -> (i32, i32) {
    %c0_i32 = arith.constant 0 : i32
    %c0_i32_0 = arith.constant 0 : i32
    %c0_i32_1 = arith.constant 0 : i32
    return %c0_i32, %c0_i32_0 : i32, i32
  }
  func.func @transform_13(%arg0: i32) -> (i32, i32) {
    %c0_i32 = arith.constant 0 : i32
    %c0_i32_0 = arith.constant 0 : i32
    %c0_i32_1 = arith.constant 0 : i32
    return %c0_i32, %c0_i32_0 : i32, i32
  }
  func.func @transform_14(%arg0: i32) -> (i32, i32, i32) {
    %c0_i32 = arith.constant 0 : i32
    %c0_i32_0 = arith.constant 0 : i32
    %c0_i32_1 = arith.constant 0 : i32
    return %arg0, %c0_i32, %c0_i32_0 : i32, i32, i32
  }
}

</mosaic_0001>

<bundles_post_ra>
// kernel: tpu_custom_call.1
= control target key start
LH: loop header
LB: loop body
LE: loop exit
PB: predicated region body
PF: predicated region fallthrough
CT: control target
= control target key end

     0   :  { %s1996_s0 = inlined_call_operand.vmem [shape: f32[2,8,32], index: 0, kind: input, shape index: {}]   ;;  %s1997_s1 = inlined_call_operand.vmem [shape: f32[2,1,8], index: 1, kind: input, shape index: {}]   ;;  %s1998_s2 = inlined_call_operand.vmem [shape: f32[32,96], index: 2, kind: input, shape index: {}]   ;;  %s1999_s3 = inlined_call_operand.vmem [shape: f32[1,96], index: 3, kind: input, shape index: {}]   ;;  %s2000_s4 = inlined_call_operand.vmem [shape: f32[32,32], index: 4, kind: input, shape index: {}]   ;;  %s2001_s5 = inlined_call_operand.vmem [shape: f32[1,32], index: 5, kind: input, shape index: {}]   ;;  %s2002_s6 = inlined_call_operand.vmem [shape: f32[1,32], index: 6, kind: input, shape index: {}]   ;;  %s2003_s7 = inlined_call_operand.vmem [shape: f32[1,32], index: 7, kind: input, shape index: {}]   ;;  %s2004_s8 = inlined_call_operand.vmem [shape: f32[32,128], index: 8, kind: input, shape index: {}]   ;;  %s2005_s9 = inlined_call_operand.vmem [shape: f32[1,128], index: 9, kind: input, shape index: {}]   ;;  %s2006_s10 = inlined_call_operand.vmem [shape: f32[128,32], index: 10, kind: input, shape index: {}]   ;;  %s2007_s11 = inlined_call_operand.vmem [shape: f32[1,32], index: 11, kind: input, shape index: {}]   ;;  %s2008_s12 = inlined_call_operand.vmem [shape: f32[1,32], index: 12, kind: input, shape index: {}]   ;;  %s2009_s13 = inlined_call_operand.vmem [shape: f32[1,32], index: 13, kind: input, shape index: {}]   ;;  %s2010_s14 = inlined_call_operand.hbm [shape: f32[2,8,32], index: 14, kind: output, shape index: {}]  }
   0x1   :  { %2011 = sst [smem:[#allocation7_spill]] %s1996_s0 }
   0x2   :  { %2012 = sst [smem:[#allocation8_spill]] %s1997_s1 }
   0x3   :  { %2013 = sst [smem:[#allocation9_spill]] %s1998_s2 }
   0x4   :  { %2014 = sst [smem:[#allocation10_spill]] %s1999_s3 }
   0x5   :  { %19 = vsyncpa [#allocation4], 0 }
   0x6   :  { %21 = vsyncpa [#allocation4 + $0x1], 0  ;;  %s1724_s29 = smov 0   ;;  %s1726_s30 = smov 0  }
   0x7   :  { %s1728_s15 = smov 0   ;;  %s1730_s16 = smov 0  }
   0x8 LB: > { %s1745_s17 = sadd.s32 4294967295, %s1637_s16   ;;  %s1317_s18 = sadd.s32 4294967294, %s1637_s16   ;;  %s1637_s16 = sphi %s1730_s16, %s2026_s16   ;;  %s1633_s15 = sphi %s1728_s15, %s2025_s15   ;;  %s1629_s30 = sphi %s1726_s30, %s2024_s30   ;;  %s1625_s29 = sphi %s1724_s29, %s2023_s29  }
   0x9   : > { %s1749_s19 = sadd.s32 1, %s1637_s16   ;;  %s338_s20 = sadd.s32 1, %s1633_s15 }
   0xa   : > { %s335_s21 = ssub.s32 %s1637_s16, %s1749_s19  ;;  %p348_p0 = scmp.ne.s32.totalorder %s1633_s15, %s1629_s30 }
   0xb   : > { %p336_p1 = scmp.eq.s32.totalorder %s335_s21, 0  ;;  %p349_p2 = scmp.eq.s32.totalorder %s1745_s17, 1 }
   0xc   : > { %p354_p3 = scmp.ne.s32.totalorder %s1629_s30, %s1625_s29  ;;  %p355_p4 = scmp.eq.s32.totalorder %s1317_s18, 1 }
   0xd   : > { %s1760_s22 = scalar_select %p336_p1, %s1633_s15, %s338_s20  }
   0xe   : > { %p1762_p5 = por %p349_p2, %p348_p0  ;;  %p1766_p6 = por %p355_p4, %p354_p3 }
   0xf   : > { %2015 = sst [smem:[#allocation6_spill]] %s1760_s22  ;;  %p1320_p7 = scmp.ge.s32.totalorder %s1637_s16, 1 }
  0x10   : > { %p422_p8 = scmp.lt.s32.totalorder %s1637_s16, 3 }
  0x12   : > { %p423_p9 = pnand %p1320_p7, %p422_p8 }
  0x13   : > { %s2018_s2 = sld [smem:[#allocation9_spill]] (!%p423_p9)  ;;  %v1639_v3 = vmov (!%p423_p9), 0.0|0.0   ;;  %vm1640_vm0 = vmmov (!%p423_p9), 0   ;;  %v1641_v6 = vmov (!%p423_p9), 0.0   ;;  %p470_p10 = scmp.lt.s32.totalorder (!%p423_p9), %s1745_s17, 1  ;;  %vm490_vm1 = vcmask (!%p423_p9), 261120  }
  0x14   : > { %426 = sbr.rel (%p423_p9) target bundleno = 2368 (0x940), region = 76  ;;  %1473 = vmatprep.subr.bf16.mxu1 (!%p423_p9), %v1639_v3  ;;  %1393 = vmatprep.mubr.msk.f32.mxu1 (!%p423_p9), %vm1640_vm0, %v1641_v6  ;;  %s2019_s0 = sld [smem:[#allocation7_spill]] (!%p423_p9)  ;;  %vm574_vm2 = vcmask (!%p423_p9), 130048   ;;  %vm650_vm3 = vcmask (!%p423_p9), 64512   ;;  %v911_v40 = vld [vmem:[%s2000_s4] sm:$0xff] (!%p423_p9)  ;;  %v912_v41 = vld [vmem:[%s2000_s4 + $0x8] sm:$0xff] (!%p423_p9) }
  0x15   : > { %1406 = vmatprep.subr.mxu0 (!%p423_p9), %v1641_v6  ;;  %1408 = vmatprep.mubr.msk.f32.mxu0 (!%p423_p9), %vm1640_vm0, %v1641_v6  ;;  %s2020_s3 = sld [smem:[#allocation10_spill]] (!%p423_p9)  ;;  %s1642_s21 = smov (!%p423_p9), 96   ;;  %v1480_v42 = vpack.c.bf16 (!%p423_p9), %v912_v41, %v911_v40  ;;  %v913_v43 = vld [vmem:[%s2000_s4 + $0x10] sm:$0xff] (!%p423_p9)  ;;  %v914_v44 = vld [vmem:[%s2000_s4 + $0x18] sm:$0xff] (!%p423_p9)  ;;  %vm908_vm4 = vcmask (!%p423_p9), 261248  }
  0x16   : > { %s1644_s26 = smov (!%p423_p9), 80   ;;  %s2021_s1 = sld [smem:[#allocation8_spill]] (!%p423_p9)  ;;  %v1483_v45 = vpack.c.bf16 (!%p423_p9), %v914_v44, %v913_v43  ;;  %v1332_v56 = vld [vmem:[%s2001_s5] ss:$0 sm:$0xff] (!%p423_p9)  ;;  %v1126_v40 = vld [vmem:[%s2006_s10 + $0x78] sm:$0xff] (!%p423_p9) }
  0x17   : > { %s1645_s20 = smov (!%p423_p9), 48   ;;  %s467_s27 = sand.u32 (!%p423_p9), 1, %s1629_s30  }
  0x19   : > { %v479_v0 = vld [vmem:[%s2018_s2] sm:$0xff] (!%p423_p9)  ;;  %v480_v1 = vld [vmem:[%s2018_s2 + $0x8] sm:$0xff] (!%p423_p9)  ;;  %v481_v2 = vld [vmem:[%s2018_s2 + $0x10] sm:$0xff] (!%p423_p9) }
  0x1a   : > { %v1474_v4 = vpack.c.bf16 (!%p423_p9), %v480_v1, %v479_v0  ;;  %v482_v5 = vld [vmem:[%s2018_s2 + $0x18] sm:$0xff] (!%p423_p9) }
  0x1b   : > { %v1477_v7 = vpack.c.bf16 %v482_v5, %v481_v2  ;;  %s1792_s25 = scalar_select %p470_p10, %s1745_s17, 1  ;;  %v1323_v9 = vld [vmem:[%s2020_s3] ss:$0 sm:$0xff]  ;;  %v1027_v5 = vld [vmem:[%s2004_s8 + $0x8] sm:$0xff] }
  0x1c   : > { %1475 = vmatpush3.bf16.msra.mxu1 %v1474_v4  ;;  %v1026_v4 = vld [vmem:[%s2004_s8] sm:$0xff] }
  0x1d   : > { %1476 = vmatprep.subr.bf16.mxu1 %v1639_v3  ;;  %s1322_s22 = sshll.u32 %s1792_s25, 3  ;;  %s476_s18 = scalar_lea.vmem %s2021_s1, %s1792_s25 }
  0x1e   : > { %s473_s28 = scalar_lea.vmem %s2019_s0, %s1322_s22  ;;  %s1643_s22 = smov 112   ;;  %v1325_v17 = vld [vmem:[%s476_s18] ss:$0 sm:$0xff] }
  0x1f   : > { %v1799_v8 = vld [vmem:[%s473_s28] sm:$0xff]  ;;  %s1647_s25 = smov 16   ;;  %s1321_s28 = sshll.u32 %s467_s27, 3 }
  0x20   : > { %1478 = vmatpush3.bf16.msra.mxu1 %v1477_v7  ;;  %v1028_v7 = vld [vmem:[%s2004_s8 + $0x10] sm:$0xff]  ;;  %s1236_s0 = scalar_lea.sflag [#allocation4], %s467_s27 }
  0x21   : > { %1396 = vmatprep.subr.mxu1 %v1641_v6 }
  0x23   : > { %1394 = vmatmul.mubr.msk.f32.vlgmr.msra.gmra.mrb[0].mxu1 %vm490_vm1, %v1799_v8 }
  0x24   : > { %1398 = vmatprep.mubr.msk.f32.mxu1 %vm1640_vm0, %v1641_v6 }
  0xf6   : > { %v560_v10 = vpop.f32.mrb[0].mxu1 }
  0xf7   : > { %v561_v11 = vadd.f32 %v1323_v9, %v560_v10  ;;  %v1395_v12 = vpop.f32.mrb[1].mxu1  ;;  %v1111_v10 = vld [vmem:[%s2006_s10] sm:$0xff] }
  0xf8   : > { %v1113_v12 = vld [vmem:[%s2006_s10 + $0x10] sm:$0xff] }
  0xf9   : > { %572 = vrot.lane.b32.xlu0 %v561_v11, %s1642_s21  ;;  %v564_v13 = vmul.f32 0.17677669, %v561_v11  ;;  %s1646_s21 = smov 64  }
  0xfb   : > { %739 = vrot.lane.b32.xlu1 %v564_v13, %s1643_s22 }
  0xfd   : > { %741 = vrot.lane.b32.xlu0 %v561_v11, %s1644_s26 }
 0x16b   : > { %v573_v14 = vpop.permute.xlu0 %572 }
 0x16c   : > { %1397 = vmatpush3.xpose.msk.msra.mxu1 %vm574_vm2, %v573_v14  ;;  %v1114_v14 = vld [vmem:[%s2006_s10 + $0x18] sm:$0xff] }
 0x16d   : > { %1401 = vmatprep.subr.mxu1 %v1641_v6  ;;  %v740_v16 = vpop.permute.xlu1 %739 }
 0x16f   : > { %v742_v15 = vpop.permute.xlu0 %741  ;;  %1399 = vmatmul.mubr.msk.f32.vlgmr.msra.gmra.mrb[2].mxu1 %vm574_vm2, %v564_v13 }
 0x170   : > { %1407 = vmatpush3.xpose.msk.msra.mxu0 %vm574_vm2, %v742_v15  ;;  %1403 = vmatprep.mubr.msk.f32.mxu1 %vm1640_vm0, %v1641_v6  ;;  %v1495_v15 = vpack.c.bf16 %v1114_v14, %v1113_v12 }
 0x171   : > { %1491 = vmatprep.subr.bf16.mxu0 %v1639_v3 }
 0x173   : > { %1409 = vmatmul.mubr.msk.f32.vlgmr.msra.gmra.mrb[0].mxu0 %vm574_vm2, %v740_v16  ;;  %v1115_v16 = vld [vmem:[%s2006_s10 + $0x20] sm:$0xff] }
 0x174   : > { %1470 = vmatprep.mubr.msk.f32.mxu0 %vm1640_vm0, %v1641_v6 }
 0x242   : > { %v646_v18 = vpop.f32.mrb[2].mxu1 }
 0x243   : > { %v647_v19 = vadd.f32 %v1325_v17, %v646_v18  ;;  %v1400_v20 = vpop.f32.mrb[3].mxu1 }
 0x244   : > { %v1118_v20 = vld [vmem:[%s2006_s10 + $0x38] sm:$0xff] }
 0x245   : > { %v651_v21 = vsel %vm650_vm3, %v647_v19, -inf }
 0x246   : > { %v813_v22 = vpop.f32.mrb[0].mxu0  ;;  %652 = vmax.xlane.f32.xlu1 %v651_v21 }
 0x247   : > { %v814_v23 = vadd.f32 %v1325_v17, %v813_v22  ;;  %v1410_v24 = vpop.f32.mrb[1].mxu0  ;;  %v1116_v17 = vld [vmem:[%s2006_s10 + $0x28] sm:$0xff]  ;;  %v1119_v22 = vld [vmem:[%s2006_s10 + $0x40] sm:$0xff] }
 0x248   : > { %v1498_v18 = vpack.c.bf16 %v1116_v17, %v1115_v16 }
 0x249   : > { %v817_v25 = vsel %vm650_vm3, %v814_v23, -inf }
 0x24a   : > { %818 = vmax.xlane.f32.xlu0 %v817_v25  ;;  %v1121_v25 = vld [vmem:[%s2006_s10 + $0x50] sm:$0xff] }
 0x257   : > { %826 = vrot.lane.b32.xlu1 %v561_v11, %s1645_s20 }
 0x260   : > { %660 = vrot.lane.b32.xlu0 %v561_v11, %s1646_s21  ;;  %v1112_v11 = vld [vmem:[%s2006_s10 + $0x8] sm:$0xff]  ;;  %s1342_s21 = sshll.u32 %s1745_s17, 7  ;;  %s1648_s17 = smov [#allocation3]  }
 0x261   : > { %v1492_v13 = vpack.c.bf16 %v1112_v11, %v1111_v10  ;;  %s1953_s3 = scalar_lea.hbm %s2010_s14, %s1342_s21 }
 0x263   : > { %1493 = vmatpush3.bf16.msra.mxu0 %v1492_v13 }
 0x264   : > { %1494 = vmatprep.subr.bf16.mxu0 %v1639_v3 }
 0x267   : > { %1496 = vmatpush3.bf16.msra.mxu0 %v1495_v15 }
 0x268   : > { %1497 = vmatprep.subr.bf16.mxu0 %v1639_v3 }
 0x26b   : > { %1499 = vmatpush3.bf16.msra.mxu0 %v1498_v18 }
 0x26c   : > { %1500 = vmatprep.subr.bf16.mxu0 %v1639_v3 }
 0x2d3   : > { %v653_v26 = vpop.xlane.xlu1 %652 }
 0x2d4   : > { %v654_v27 = vsub.f32 %v647_v19, %v653_v26  ;;  %v1117_v19 = vld [vmem:[%s2006_s10 + $0x30] sm:$0xff]  ;;  %v1122_v26 = vld [vmem:[%s2006_s10 + $0x58] sm:$0xff] }
 0x2d5   : > { %v1501_v21 = vpack.c.bf16 %v1118_v20, %v1117_v19 }
 0x2d6   : > { %v655_v28 = vmul.f32 1.442695, %v654_v27  ;;  %v1507_v27 = vpack.c.bf16 %v1122_v26, %v1121_v25 }
 0x2d7   : > { %v819_v29 = vpop.xlane.xlu0 %818  ;;  %v827_v34 = vpop.permute.xlu1 %826  ;;  %1502 = vmatpush3.bf16.msra.mxu0 %v1501_v21 }
 0x2d8   : > { %1563 = vpow2.f32 %v655_v28  ;;  %v820_v30 = vsub.f32 %v814_v23, %v819_v29  ;;  %v1120_v23 = vld [vmem:[%s2006_s10 + $0x48] sm:$0xff]  ;;  %1503 = vmatprep.subr.bf16.mxu0 %v1639_v3  ;;  %v1123_v28 = vld [vmem:[%s2006_s10 + $0x60] sm:$0xff] }
 0x2d9   : > { %v1504_v24 = vpack.c.bf16 %v1120_v23, %v1119_v22  ;;  %v1124_v29 = vld [vmem:[%s2006_s10 + $0x68] sm:$0xff] }
 0x2da   : > { %v821_v31 = vmul.f32 1.442695, %v820_v30  ;;  %v1510_v30 = vpack.c.bf16 %v1124_v29, %v1123_v28 }
 0x2db   : > { %v661_v32 = vpop.permute.xlu0 %660  ;;  %1505 = vmatpush3.bf16.msra.mxu0 %v1504_v24 }
 0x2dc   : > { %1565 = vpow2.f32 %v821_v31  ;;  %1402 = vmatpush3.msra.mxu1 %v661_v32  ;;  %1506 = vmatprep.subr.bf16.mxu0 %v1639_v3 }
 0x2dd   : > { %1411 = vmatprep.subr.mxu1 %v1641_v6 }
 0x2df   : > { %1508 = vmatpush3.bf16.msra.mxu0 %v1507_v27 }
 0x2e0   : > { %1509 = vmatprep.subr.bf16.mxu0 %v1639_v3 }
 0x2e2   : > { %v1564_v33 = vpop.eup %1563 }
 0x2e3   : > { %1404 = vmatmul.mubr.msk.f32.vlgmr.msra.gmra.mrb[4].mxu1 %vm650_vm3, %v1564_v33  ;;  %v657_v35 = vsel %vm650_vm3, %v1564_v33, 0.0  ;;  %1511 = vmatpush3.bf16.msra.mxu0 %v1510_v30 }
 0x2e4   : > { %1412 = vmatpush3.msra.mxu1 %v827_v34  ;;  %658 = vadd.xlane.f32.xlu0 %v657_v35  ;;  %v1334_v35 = vld [vmem:[%s2002_s6] ss:$0 sm:$0xff] }
 0x2e5   : > { %1413 = vmatprep.mubr.msk.f32.mxu1 %vm1640_vm0, %v1641_v6  ;;  %1479 = vmatprep.subr.bf16.mxu1 %v1639_v3 }
 0x2e6   : > { %v1566_v36 = vpop.eup %1565  ;;  %1512 = vmatprep.subr.bf16.mxu0 %v1639_v3 }
 0x2e7   : > { %1414 = vmatmul.mubr.msk.f32.vlgmr.msra.gmra.mrb[6].mxu1 %vm650_vm3, %v1566_v36  ;;  %v823_v37 = vsel %vm650_vm3, %v1566_v36, 0.0 }
 0x2e8   : > { %824 = vadd.xlane.f32.xlu1 %v823_v37  ;;  %1424 = vmatprep.mubr.msk.f32.mxu1 %vm1640_vm0, %v1641_v6  ;;  %v1335_v37 = vld [vmem:[%s2003_s7] ss:$0 sm:$0xff] }
 0x2e9   : > { %1481 = vmatpush3.bf16.msra.mxu1 %v1480_v42  ;;  %v1336_v42 = vld [vmem:[%s2005_s9] ss:$0 sm:$0xff] }
 0x2ea   : > { %1482 = vmatprep.subr.bf16.mxu1 %v1639_v3 }
 0x2ed   : > { %1484 = vmatpush3.bf16.msra.mxu1 %v1483_v45 }
 0x2ee   : > { %1485 = vmatprep.subr.bf16.mxu1 %v1639_v3 }
 0x371   : > { %v659_v38 = vpop.xlane.xlu0 %658 }
 0x372   : > { %1567 = vrcp.f32 %v659_v38 }
 0x375   : > { %v825_v39 = vpop.xlane.xlu1 %824 }
 0x376   : > { %1569 = vrcp.f32 %v825_v39 }
 0x37c   : > { %v1568_v46 = vpop.eup %1567 }
 0x380   : > { %v1570_v50 = vpop.eup %1569 }
 0x3b6   : > { %v732_v47 = vpop.f32.mrb[4].mxu1 }
 0x3b7   : > { %v737_v48 = vmul.f32 %v1568_v46, %v732_v47  ;;  %v1405_v49 = vpop.f32.mrb[5].mxu1  ;;  %v1338_v47 = vld [vmem:[%s2007_s11] ss:$0 sm:$0xff] }
 0x3b9   : > { %738 = vst.msk [vmem:[#allocation2] sm:$0xff] %vm574_vm2, %v737_v48 }
 0x3ba   : > { %v898_v51 = vpop.f32.mrb[6].mxu1 }
 0x3bb   : > { %v903_v52 = vmul.f32 %v1570_v50, %v898_v51  ;;  %v1415_v53 = vpop.f32.mrb[7].mxu1 }
 0x3bd   : > { %905 = vrot.lane.b32.xlu0 %v903_v52, %s1647_s25  ;;  %s469_s25 = scalar_lea.vmem [#allocation3], %s1321_s28  ;;  %s1579_s28 = sshll.u32 %s1648_s17, 4  ;;  %s1580_s28 = int_to_ptr.vmem [resolvable:$false] %s1579_s28 }
 0x3be   : > { %s1249_s22 = sshll.u32 %s469_s25, 4  ;;  %s1581_s18 = scalar_lea.vmem %s1580_s28, 256  ;;  %s1955_s22 = int_to_ptr.vmem [resolvable:$true] %s1249_s22 }
 0x3bf   : > { %s1575_s1 = scalar_lea.vmem %s1955_s22, 128  ;;  %p1582_p0 = scmp.lt.s32.totalorder %s1955_s22, %s1580_s28 }
 0x3c0   : > { %p1576_p11 = scmp.ne.s32.totalorder %s1955_s22, %s1575_s1  ;;  %p1583_p1 = scmp.lt.s32.totalorder %s1581_s18, %s1575_s1 }
 0x3c2   : > { %p1577_p12 = pnand %p1576_p11, %p1762_p5  ;;  %p1584_p2 = por %p1583_p1, %p1582_p0 }
 0x3c4   : > { %p1578_p13 = pneg %p1577_p12 }
 0x3c6   : > { %p1585_p3 = pnand %p1584_p2, %p1578_p13 }
 0x42f   : > { %v906_v54 = vpop.permute.xlu0 %905 }
 0x430   : > { %909 = vst.msk [vmem:[#allocation2] sm:$0xff] %vm908_vm4, %v906_v54 }
 0x437   : > { %v910_v55 = vld [vmem:[#allocation2] sm:$0xff] }
 0x438   : > { %1425 = vmatmul.mubr.msk.f32.vlgmr.msra.gmra.mrb[8].mxu1 %vm490_vm1, %v910_v55 }
 0x439   : > { %1435 = vmatprep.mubr.msk.f32.mxu1 %vm1640_vm0, %v1641_v6  ;;  %v1486_v6 = vpack.c.bf16 %v1027_v5, %v1026_v4 }
 0x43b   : > { %1487 = vmatpush3.bf16.msra.mxu1 %v1486_v6 }
 0x43c   : > { %1488 = vmatprep.subr.bf16.mxu1 %v1639_v3  ;;  %v1125_v3 = vld [vmem:[%s2006_s10 + $0x70] sm:$0xff] }
 0x43d   : > { %v1513_v41 = vpack.c.bf16 %v1126_v40, %v1125_v3 }
 0x43f   : > { %1514 = vmatpush3.bf16.msra.mxu0 %v1513_v41 }
 0x50b   : > { %v991_v57 = vpop.f32.mrb[8].mxu1 }
 0x50c   : > { %v992_v58 = vadd.f32 %v1332_v56, %v991_v57  ;;  %v1426_v59 = vpop.f32.mrb[9].mxu1 }
 0x50e   : > { %v995_v60 = vadd.f32 %v992_v58, %v1799_v8  ;;  %v1029_v8 = vld [vmem:[%s2004_s8 + $0x18] sm:$0xff] }
 0x50f   : > { %v1489_v9 = vpack.c.bf16 %v1029_v8, %v1028_v7 }
 0x510   : > { %v998_v61 = vsel %vm490_vm1, %v995_v60, 0.0 }
 0x511   : > { %999 = vadd.xlane.f32.xlu1 %v998_v61  ;;  %1490 = vmatpush3.bf16.msra.mxu1 %v1489_v9 }
 0x59e   : > { %v1000_v62 = vpop.xlane.xlu1 %999 }
 0x59f   : > { %v1002_v63 = vmul.f32 0.03125, %v1000_v62  ;;  %v1339_v62 = vld [vmem:[%s2008_s12] ss:$0 sm:$0xff] }
 0x5a1   : > { %v1003_v0 = vsub.f32 %v995_v60, %v1002_v63 }
 0x5a3   : > { %v1004_v1 = vmul.f32 %v1003_v0, %v1003_v0 }
 0x5a5   : > { %v1005_v2 = vsel %vm490_vm1, %v1004_v1, 0.0 }
 0x5a6   : > { %1006 = vadd.xlane.f32.xlu1 %v1005_v2 }
 0x633   : > { %v1007_v31 = vpop.xlane.xlu1 %1006 }
 0x634   : > { %v1008_v32 = vmul.f32 0.03125, %v1007_v31 }
 0x636   : > { %v1009_v33 = vadd.f32 1e-05, %v1008_v32 }
 0x638   : > { %1571 = vrsqrt.f32 %v1009_v33 }
 0x642   : > { %v1572_v34 = vpop.eup %1571 }
 0x643   : > { %v1011_v36 = vmul.f32 %v1572_v34, %v1003_v0  ;;  %v1340_v0 = vld [vmem:[%s2009_s13] ss:$0 sm:$0xff] }
 0x645   : > { %v1018_v38 = vmul.f32 %v1334_v35, %v1011_v36 }
 0x647   : > { %v1025_v39 = vadd.f32 %v1335_v37, %v1018_v38 }
 0x649   : > { %1436 = vmatmul.mubr.msk.f32.vlgmr.msra.gmra.mrb[10].mxu1 %vm490_vm1, %v1025_v39 }
 0x71c   : > { %v1106_v43 = vpop.f32.mrb[10].mxu1 }
 0x71d   : > { %v1107_v44 = vadd.f32 %v1336_v42, %v1106_v43  ;;  %v1437_v45 = vpop.f32.mrb[11].mxu1 }
 0x71f   : > { %v1110_v46 = vmax.f32 %v1107_v44, 0.0 }
 0x721   : > { %1471 = vmatmul.mubr.f32.vlgmr.msra.gmra.mrb[2].mxu0 %v1110_v46 }
 0x7f4   : > { %v1200_v48 = vpop.f32.mrb[2].mxu0 }
 0x7f5   : > { %v1201_v49 = vadd.f32 %v1338_v47, %v1200_v48  ;;  %v1472_v50 = vpop.f32.mrb[3].mxu0 }
 0x7f7   : > { %v1204_v51 = vadd.f32 %v1201_v49, %v1025_v39 }
 0x7f9   : > { %v1207_v52 = vsel %vm490_vm1, %v1204_v51, 0.0 }
 0x7fa   : > { %1208 = vadd.xlane.f32.xlu1 %v1207_v52 }
 0x887   : > { %v1209_v53 = vpop.xlane.xlu1 %1208 }
 0x888   : > { %v1210_v54 = vmul.f32 0.03125, %v1209_v53 }
 0x88a   : > { %v1211_v55 = vsub.f32 %v1204_v51, %v1210_v54 }
 0x88c   : > { %v1212_v56 = vmul.f32 %v1211_v55, %v1211_v55 }
 0x88e   : > { %v1213_v57 = vsel %vm490_vm1, %v1212_v56, 0.0 }
 0x88f   : > { %1214 = vadd.xlane.f32.xlu1 %v1213_v57 }
 0x91c   : > { %v1215_v58 = vpop.xlane.xlu1 %1214 }
 0x91d   : > { %v1216_v59 = vmul.f32 0.03125, %v1215_v58 }
 0x91f   : > { %v1217_v60 = vadd.f32 1e-05, %v1216_v59 }
 0x921   : > { %1573 = vrsqrt.f32 %v1217_v60 }
 0x92b   : > { %v1574_v61 = vpop.eup %1573 }
 0x92c   : > { %v1219_v63 = vmul.f32 %v1574_v61, %v1211_v55 }
 0x92e   : > { %v1226_v1 = vmul.f32 %v1339_v62, %v1219_v63 }
 0x930   : > { %v1233_v2 = vadd.f32 %v1340_v0, %v1226_v1 }
 0x932   : > { %1234 = vst.msk [vmem:[%s469_s25] sm:$0xff] %vm490_vm1, %v1233_v2 }
 0x933   : > { %1588 = shalt.err (!%p1585_p3)
}
 0x934   : > { %s1589_s2 = scalar_lea.hbm %s1953_s3, 128  ;;  %s1593_s21 = scalar_lea.hbm %s2010_s14, 256 }
 0x935   : > { %p1590_p4 = scmp.ne.s32.totalorder %s1953_s3, %s1589_s2  ;;  %p1594_p9 = scmp.lt.u32.totalorder %s1953_s3, %s2010_s14 }
 0x936   : > { %p1595_p10 = scmp.lt.u32.totalorder %s1593_s21, %s1589_s2  ;;  %p1597_p12 = scmp.lt.u32.totalorder %s1589_s2, %s1953_s3 }
 0x937   : > { %p1591_p7 = pnand %p1590_p4, %p1762_p5 }
 0x938   : > { %p1596_p11 = por %p1595_p10, %p1594_p9 }
 0x939   : > { %p1592_p8 = pneg %p1591_p7 }
 0x93a   : > { %p1598_p13 = por %p1597_p12, %p1596_p11 }
 0x93c   : > { %p1599_p0 = pnand %p1598_p13, %p1592_p8 }
 0x93e   : > { %1602 = shalt.err (!%p1599_p0)
}
 0x93f   : > { %1515 = dma.vmem_to_hbm [thread:$0]  (%p1762_p5), %s1955_s22, 128, %s1953_s3, %s1236_s0  }
 0x940 PF: > { %p1521_p1 = scmp.ge.s32.totalorder %s1637_s16, 2  ;;  %s1261_s1 = sand.u32 1, %s1625_s29  }
 0x941   : > { %s1262_s17 = scalar_lea.sflag [#allocation4], %s1261_s1 }
 0x942   : > { %p1518_p2 = pnand %p1521_p1, %p1766_p6 }
 0x944   : > { %1620 = dma.done.wait (!%p1518_p2), %s1262_s17, 128  }
 0x945   : > { %1622 = vsyncadd (!%p1518_p2), %s1262_s17, 4294967168  ;;  %s2022_s28 = sld [smem:[#allocation6_spill]]  ;;  %p24_p3 = scmp.ge.s32.totalorder %s1749_s19, 4  }
 0x946   : > { %s2023_s29 = smov %s1629_s30  ;;  %s2024_s30 = smov %s1633_s15 }
 0x947   : > { %s2026_s16 = smov %s1749_s19  ;;  %26 = sbr.rel (!%p24_p3) target bundleno = 8 (0x8), region = 114 }
 0x94b   : > { %s2025_s15 = smov %s2022_s28 }
 0x94e   :  { %1267 = vsyncpa [#allocation4], 1 }
 0x94f   :  { %1269 = vsyncpa [#allocation4 + $0x1], 1 }

</bundles_post_ra>
